<compile_context>
chip_gen: v7x
topology: tpu7x:2x2x1
jax: 0.10.0
libtpu: 0.0.40
codegen_flags: <defaults>
</compile_context>

<pallas_src>
import functools

import jax
import jax.numpy as jnp
from jax.experimental import pallas as pl
from jax.experimental.pallas import tpu as pltpu


# ---------------------------------------------------------------------------
# Kernel: per grid step, stream a contiguous (l_block, K, H*E) weight slab,
# run one wide matmul per layer-slice and store per-head (B, S, E) slabs
# directly in the permuted output layout.
# ---------------------------------------------------------------------------
def _prefix_mlp_kernel(x_ref, w_ref, b_ref, o_ref, *, l_block, n_head,
                       head_dim, batch, seq):
    # x_ref : (M, K)                 bf16 activations, resident across the grid
    # w_ref : (l_block, K, N)        bf16 weight slab (N = n_head * head_dim)
    # b_ref : (l_block, 1, N)        f32 bias slab
    # o_ref : (l_block, B, H, S, E)  output block, already permuted layout
    x = x_ref[...]                                    # bf16, cast hoisted outside
    for j in range(l_block):                          # static unroll (small)
        y = jnp.dot(x, w_ref[j], preferred_element_type=jnp.float32)
        y = y + b_ref[j]                              # (M, N) f32
        for h in range(n_head):
            yh = y[:, h * head_dim:(h + 1) * head_dim]          # (M, E)
            # (B*S, E) -> (B, S, E) is metadata-only when S % 8 == 0.
            o_ref[j, :, h, :, :] = yh.reshape(batch, seq, head_dim).astype(
                o_ref.dtype)


def _pick_l_block(l2, bytes_per_slice, max_slab_bytes=4 << 20, max_l_block=8):
    """Largest divisor of l2 keeping >=2 grid steps and a modest VMEM slab."""
    best = 1
    for d in range(1, min(l2 // 2, max_l_block) + 1):
        if l2 % d == 0 and d * bytes_per_slice <= max_slab_bytes:
            best = d
    return best


def prefix_mlp_fused(x2d, w_lkn, b_l1n, *, batch, seq, n_head, head_dim,
                     out_dtype=jnp.bfloat16, l_block=None):
    """Fused prefix MLP + permute([2,0,3,1,4]).

    x2d    : (B*S, K) bf16 activations
    w_lkn  : (L*2, K, H*E) bf16 packed weight (contiguous per layer-slice)
    b_l1n  : (L*2, 1, H*E) f32 bias
    returns: (L*2, B, H, S, E) in `out_dtype`
    """
    M, K = x2d.shape
    L2, K2, N = w_lkn.shape
    assert K2 == K and N == n_head * head_dim
    assert M == batch * seq and b_l1n.shape == (L2, 1, N)

    w_slice_bytes = K * N * w_lkn.dtype.itemsize
    if l_block is None:
        l_block = _pick_l_block(L2, w_slice_bytes)
    assert L2 % l_block == 0 and L2 // l_block >= 2   # >=2 parallel steps (v7x)
    grid = (L2 // l_block,)

    out_itemsize = jnp.dtype(out_dtype).itemsize
    # VMEM need: resident x + double-buffered (weight + bias + output) blocks
    # + headroom for Mosaic internals.  Cap at 48 MiB: safe on v7x (64 MiB/TC),
    # comfortably below v5e/v6e's 128 MiB.
    block_bytes = (l_block * K * N * w_lkn.dtype.itemsize
                   + l_block * N * 4
                   + l_block * M * N * out_itemsize)
    vmem_limit = int(min(max(M * K * x2d.dtype.itemsize + 2 * block_bytes
                             + (4 << 20), 16 << 20), 48 << 20))

    kernel = functools.partial(_prefix_mlp_kernel, l_block=l_block,
                               n_head=n_head, head_dim=head_dim,
                               batch=batch, seq=seq)

    return pl.pallas_call(
        kernel,
        out_shape=jax.ShapeDtypeStruct((L2, batch, n_head, seq, head_dim),
                                       out_dtype),
        grid_spec=pltpu.PrefetchScalarGridSpec(
            num_scalar_prefetch=0,
            grid=grid,
            in_specs=[
                # activations: constant block index -> DMA'd once, resident
                pl.BlockSpec((M, K), lambda g: (0, 0)),
                # contiguous bf16 weight slab for l_block layer-slices
                pl.BlockSpec((l_block, K, N), lambda g: (g, 0, 0)),
                # matching f32 bias slab (one small DMA per fat step)
                pl.BlockSpec((l_block, 1, N), lambda g: (g, 0, 0)),
            ],
            # Output written directly in (L*2, B, H, S, E) layout: the torch
            # view + permute([2,0,3,1,4]) + split are fused into the kernel.
            out_specs=pl.BlockSpec(
                (l_block, batch, n_head, seq, head_dim),
                lambda g: (g, 0, 0, 0, 0)),
        ),
        compiler_params=pltpu.CompilerParams(
            dimension_semantics=("parallel",),
            vmem_limit_bytes=vmem_limit),
    )(x2d, w_lkn, b_l1n)


# ---------------------------------------------------------------------------
# Module-equivalent wrapper
# ---------------------------------------------------------------------------
class PrefixEncoderMGAPallas:
    def __init__(self, *, zdim, hidden_size, ztokens, num_attention_heads,
                 num_key_value_heads, shallow_decoder_n_layer, key,
                 weight_dtype=jnp.bfloat16, out_dtype=jnp.bfloat16):
        self.input_dim = zdim
        self.hidden_dim = hidden_size
        self.prefix_seq_len = ztokens
        self.match_n_layer = shallow_decoder_n_layer
        self.match_n_head = num_key_value_heads
        self.match_n_embd = hidden_size // num_attention_heads
        self.out_dtype = out_dtype

        L2 = 2 * self.match_n_layer
        K, H, E = self.input_dim, self.match_n_head, self.match_n_embd
        N = H * E
        out_dim = L2 * N

        # Deterministic PyTorch-Linear-like uniform init (bound = 1/sqrt(K)).
        kw, kb = jax.random.split(key)
        bound = 1.0 / (K ** 0.5)
        w_kn = jax.random.uniform(kw, (K, out_dim), jnp.float32, -bound, bound)
        b_n = jax.random.uniform(kb, (out_dim,), jnp.float32, -bound, bound)

        # Pack weight as (L*2, K, H*E): each layer-slice is a contiguous bf16
        # slab in HBM so one grid step can stream several slabs in one DMA.
        self.weight_lkn = jnp.transpose(
            w_kn.reshape(K, L2, N), (1, 0, 2)).astype(weight_dtype)
        self.bias_l1n = b_n.reshape(L2, 1, N).astype(jnp.float32)

    def __call__(self, input_embd):
        # input_embd: (B, S, zdim)
        B, S, K = input_embd.shape
        assert S == self.prefix_seq_len and K == self.input_dim

        # Hoisted activation cast: bf16 once here, resident in VMEM in-kernel.
        x2d = input_embd.reshape(B * S, K).astype(self.weight_lkn.dtype)
        pkv = prefix_mlp_fused(
            x2d, self.weight_lkn, self.bias_l1n,
            batch=B, seq=S, n_head=self.match_n_head,
            head_dim=self.match_n_embd, out_dtype=self.out_dtype)
        # pkv: (L*2, B, H, S, E) == permute([2,0,3,1,4]) of the torch view.
        # torch.split(pkv, 2) along dim 0 -> per-layer (key, value) pairs.
        return tuple((pkv[2 * i], pkv[2 * i + 1])
                     for i in range(self.match_n_layer))


# ---------------------------------------------------------------------------
# Pure-JAX reference with the SAME precision contract (bf16 operands, f32
# accumulation, f32 bias, cast to out_dtype) for correctness checking.
# ---------------------------------------------------------------------------
def reference_forward(module, input_embd):
    B, S, K = input_embd.shape
    L2 = 2 * module.match_n_layer
    H, E = module.match_n_head, module.match_n_embd

    w_kn = jnp.transpose(module.weight_lkn, (1, 0, 2)).reshape(K, L2 * H * E)
    b_n = module.bias_l1n.reshape(L2 * H * E)

    x = input_embd.reshape(B * S, K).astype(module.weight_lkn.dtype)
    y = jnp.dot(x, w_kn, preferred_element_type=jnp.float32) + b_n
    pkv = jnp.transpose(y.reshape(B, S, L2, H, E), (2, 0, 3, 1, 4))
    pkv = pkv.astype(module.out_dtype)          # (L*2, B, H, S, E)
    return tuple((pkv[2 * i], pkv[2 * i + 1])
                 for i in range(module.match_n_layer))


if __name__ == "__main__":
    # Small config consistent with the module:
    #   zdim=32, hidden_size=32, num_attention_heads=4 -> match_n_embd=8
    #   num_key_value_heads=4, ztokens=8, shallow_decoder_n_layer=2
    B = 2
    cfg = dict(zdim=32, hidden_size=32, ztokens=8,
               num_attention_heads=4, num_key_value_heads=4,
               shallow_decoder_n_layer=2)

    key = jax.random.PRNGKey(0)
    k_param, k_input = jax.random.split(key)

    module = PrefixEncoderMGAPallas(key=k_param, **cfg)
    input_embd = jax.random.normal(
        k_input, (B, cfg["ztokens"], cfg["zdim"]), jnp.float32)

    out = module(input_embd)
    out = jax.block_until_ready(out)

    # sanity: shapes and numerics vs the matching-precision pure-JAX reference
    ref = reference_forward(module, input_embd)
    assert len(out) == cfg["shallow_decoder_n_layer"]
    expect_shape = (B, cfg["num_key_value_heads"], cfg["ztokens"],
                    cfg["hidden_size"] // cfg["num_attention_heads"])
    for (k_p, v_p), (k_r, v_r) in zip(out, ref):
        assert k_p.shape == expect_shape and v_p.shape == expect_shape
        assert jnp.allclose(k_p.astype(jnp.float32), k_r.astype(jnp.float32),
                            atol=2e-2, rtol=2e-2)
        assert jnp.allclose(v_p.astype(jnp.float32), v_r.astype(jnp.float32),
                            atol=2e-2, rtol=2e-2)

    print("KERNEL_OK")
</pallas_src>

<mosaic_0001>
module attributes {stable_mosaic.version = 11 : i64} {
  func.func @_prefix_mlp_kernel(%arg0: i32, %arg1: memref<16x32xbf16, #tpu.memory_space<vmem>>, %arg2: memref<2x32x32xbf16, #tpu.memory_space<vmem>>, %arg3: memref<2x1x32xf32, #tpu.memory_space<vmem>>, %arg4: memref<2x2x4x8x8xbf16, #tpu.memory_space<vmem>>) attributes {dimension_semantics = [#tpu.dimension_semantics<parallel>], iteration_bounds = array<i64: 2>, scalar_prefetch = 0 : i64, scratch_operands = 0 : i64, tpu.core_type = #tpu.core_type<tc>, window_params = [{pipeline_mode = #tpu.pipeline_mode<synchronous>, transform_indices = @transform_0, window_bounds = array<i64: 16, 32>}, {transform_indices = @transform_1, window_bounds = array<i64: 2, 32, 32>}, {transform_indices = @transform_2, window_bounds = array<i64: 2, 1, 32>}, {transform_indices = @transform_3, window_bounds = array<i64: 2, 2, 4, 8, 8>}]} {
    %c0 = arith.constant 0 : index
    %c0_0 = arith.constant 0 : index
    %0 = vector.load %arg1[%c0, %c0_0] : memref<16x32xbf16, #tpu.memory_space<vmem>>, vector<16x32xbf16>
    %c0_1 = arith.constant 0 : index
    %c0_2 = arith.constant 0 : index
    %c0_3 = arith.constant 0 : index
    %1 = vector.load %arg2[%c0_1, %c0_2, %c0_3] : memref<2x32x32xbf16, #tpu.memory_space<vmem>>, vector<1x32x32xbf16>
    %2 = vector.shape_cast %1 : vector<1x32x32xbf16> to vector<32x32xbf16>
    %cst = arith.constant dense<0.000000e+00> : vector<16x32xf32>
    %3 = tpu.matmul %0, %2, %cst {dimension_numbers = #tpu.dot_dimension_numbers<[1], [0], [0], [1], [0, 0, 1, 1], [], []>} : vector<16x32xbf16>, vector<32x32xbf16>, vector<16x32xf32> -> vector<16x32xf32>
    %c0_4 = arith.constant 0 : index
    %c0_5 = arith.constant 0 : index
    %c0_6 = arith.constant 0 : index
    %4 = vector.load %arg3[%c0_4, %c0_5, %c0_6] : memref<2x1x32xf32, #tpu.memory_space<vmem>>, vector<1x1x32xf32>
    %5 = vector.shape_cast %4 : vector<1x1x32xf32> to vector<1x32xf32>
    %6 = vector.broadcast %5 : vector<1x32xf32> to vector<16x32xf32>
    %7 = arith.addf %3, %6 : vector<16x32xf32>
    %8 = vector.extract_strided_slice %7 {offsets = [0, 0], sizes = [16, 8], strides = [1, 1]} : vector<16x32xf32> to vector<16x8xf32>
    %9 = vector.shape_cast %8 : vector<16x8xf32> to vector<2x8x8xf32>
    %10 = arith.truncf %9 : vector<2x8x8xf32> to vector<2x8x8xbf16>
    %c0_7 = arith.constant 0 : index
    %c0_8 = arith.constant 0 : index
    %c0_9 = arith.constant 0 : index
    %c0_10 = arith.constant 0 : index
    %c0_11 = arith.constant 0 : index
    %11 = vector.load %arg4[%c0_7, %c0_8, %c0_9, %c0_10, %c0_11] : memref<2x2x4x8x8xbf16, #tpu.memory_space<vmem>>, vector<1x2x1x8x8xbf16>
    %12 = vector.shape_cast %11 : vector<1x2x1x8x8xbf16> to vector<2x8x8xbf16>
    %13 = vector.shape_cast %10 : vector<2x8x8xbf16> to vector<1x2x1x8x8xbf16>
    tpu.vector_store %arg4[%c0_7, %c0_8, %c0_9, %c0_10, %c0_11], %13 {strides = array<i32>} : memref<2x2x4x8x8xbf16, #tpu.memory_space<vmem>>, vector<1x2x1x8x8xbf16>,
    %14 = vector.extract_strided_slice %7 {offsets = [0, 8], sizes = [16, 8], strides = [1, 1]} : vector<16x32xf32> to vector<16x8xf32>
    %15 = vector.shape_cast %14 : vector<16x8xf32> to vector<2x8x8xf32>
    %16 = arith.truncf %15 : vector<2x8x8xf32> to vector<2x8x8xbf16>
    %c0_12 = arith.constant 0 : index
    %c0_13 = arith.constant 0 : index
    %c1 = arith.constant 1 : index
    %c0_14 = arith.constant 0 : index
    %c0_15 = arith.constant 0 : index
    %17 = vector.load %arg4[%c0_12, %c0_13, %c1, %c0_14, %c0_15] : memref<2x2x4x8x8xbf16, #tpu.memory_space<vmem>>, vector<1x2x1x8x8xbf16>
    %18 = vector.shape_cast %17 : vector<1x2x1x8x8xbf16> to vector<2x8x8xbf16>
    %19 = vector.shape_cast %16 : vector<2x8x8xbf16> to vector<1x2x1x8x8xbf16>
    tpu.vector_store %arg4[%c0_12, %c0_13, %c1, %c0_14, %c0_15], %19 {strides = array<i32>} : memref<2x2x4x8x8xbf16, #tpu.memory_space<vmem>>, vector<1x2x1x8x8xbf16>,
    %20 = vector.extract_strided_slice %7 {offsets = [0, 16], sizes = [16, 8], strides = [1, 1]} : vector<16x32xf32> to vector<16x8xf32>
    %21 = vector.shape_cast %20 : vector<16x8xf32> to vector<2x8x8xf32>
    %22 = arith.truncf %21 : vector<2x8x8xf32> to vector<2x8x8xbf16>
    %c0_16 = arith.constant 0 : index
    %c0_17 = arith.constant 0 : index
    %c2 = arith.constant 2 : index
    %c0_18 = arith.constant 0 : index
    %c0_19 = arith.constant 0 : index
    %23 = vector.load %arg4[%c0_16, %c0_17, %c2, %c0_18, %c0_19] : memref<2x2x4x8x8xbf16, #tpu.memory_space<vmem>>, vector<1x2x1x8x8xbf16>
    %24 = vector.shape_cast %23 : vector<1x2x1x8x8xbf16> to vector<2x8x8xbf16>
    %25 = vector.shape_cast %22 : vector<2x8x8xbf16> to vector<1x2x1x8x8xbf16>
    tpu.vector_store %arg4[%c0_16, %c0_17, %c2, %c0_18, %c0_19], %25 {strides = array<i32>} : memref<2x2x4x8x8xbf16, #tpu.memory_space<vmem>>, vector<1x2x1x8x8xbf16>,
    %26 = vector.extract_strided_slice %7 {offsets = [0, 24], sizes = [16, 8], strides = [1, 1]} : vector<16x32xf32> to vector<16x8xf32>
    %27 = vector.shape_cast %26 : vector<16x8xf32> to vector<2x8x8xf32>
    %28 = arith.truncf %27 : vector<2x8x8xf32> to vector<2x8x8xbf16>
    %c0_20 = arith.constant 0 : index
    %c0_21 = arith.constant 0 : index
    %c3 = arith.constant 3 : index
    %c0_22 = arith.constant 0 : index
    %c0_23 = arith.constant 0 : index
    %29 = vector.load %arg4[%c0_20, %c0_21, %c3, %c0_22, %c0_23] : memref<2x2x4x8x8xbf16, #tpu.memory_space<vmem>>, vector<1x2x1x8x8xbf16>
    %30 = vector.shape_cast %29 : vector<1x2x1x8x8xbf16> to vector<2x8x8xbf16>
    %31 = vector.shape_cast %28 : vector<2x8x8xbf16> to vector<1x2x1x8x8xbf16>
    tpu.vector_store %arg4[%c0_20, %c0_21, %c3, %c0_22, %c0_23], %31 {strides = array<i32>} : memref<2x2x4x8x8xbf16, #tpu.memory_space<vmem>>, vector<1x2x1x8x8xbf16>,
    %c1_24 = arith.constant 1 : index
    %c0_25 = arith.constant 0 : index
    %c0_26 = arith.constant 0 : index
    %32 = vector.load %arg2[%c1_24, %c0_25, %c0_26] : memref<2x32x32xbf16, #tpu.memory_space<vmem>>, vector<1x32x32xbf16>
    %33 = vector.shape_cast %32 : vector<1x32x32xbf16> to vector<32x32xbf16>
    %cst_27 = arith.constant dense<0.000000e+00> : vector<16x32xf32>
    %34 = tpu.matmul %0, %33, %cst_27 {dimension_numbers = #tpu.dot_dimension_numbers<[1], [0], [0], [1], [0, 0, 1, 1], [], []>} : vector<16x32xbf16>, vector<32x32xbf16>, vector<16x32xf32> -> vector<16x32xf32>
    %c1_28 = arith.constant 1 : index
    %c0_29 = arith.constant 0 : index
    %c0_30 = arith.constant 0 : index
    %35 = vector.load %arg3[%c1_28, %c0_29, %c0_30] : memref<2x1x32xf32, #tpu.memory_space<vmem>>, vector<1x1x32xf32>
    %36 = vector.shape_cast %35 : vector<1x1x32xf32> to vector<1x32xf32>
    %37 = vector.broadcast %36 : vector<1x32xf32> to vector<16x32xf32>
    %38 = arith.addf %34, %37 : vector<16x32xf32>
    %39 = vector.extract_strided_slice %38 {offsets = [0, 0], sizes = [16, 8], strides = [1, 1]} : vector<16x32xf32> to vector<16x8xf32>
    %40 = vector.shape_cast %39 : vector<16x8xf32> to vector<2x8x8xf32>
    %41 = arith.truncf %40 : vector<2x8x8xf32> to vector<2x8x8xbf16>
    %c1_31 = arith.constant 1 : index
    %c0_32 = arith.constant 0 : index
    %c0_33 = arith.constant 0 : index
    %c0_34 = arith.constant 0 : index
    %c0_35 = arith.constant 0 : index
    %42 = vector.load %arg4[%c1_31, %c0_32, %c0_33, %c0_34, %c0_35] : memref<2x2x4x8x8xbf16, #tpu.memory_space<vmem>>, vector<1x2x1x8x8xbf16>
    %43 = vector.shape_cast %42 : vector<1x2x1x8x8xbf16> to vector<2x8x8xbf16>
    %44 = vector.shape_cast %41 : vector<2x8x8xbf16> to vector<1x2x1x8x8xbf16>
    tpu.vector_store %arg4[%c1_31, %c0_32, %c0_33, %c0_34, %c0_35], %44 {strides = array<i32>} : memref<2x2x4x8x8xbf16, #tpu.memory_space<vmem>>, vector<1x2x1x8x8xbf16>,
    %45 = vector.extract_strided_slice %38 {offsets = [0, 8], sizes = [16, 8], strides = [1, 1]} : vector<16x32xf32> to vector<16x8xf32>
    %46 = vector.shape_cast %45 : vector<16x8xf32> to vector<2x8x8xf32>
    %47 = arith.truncf %46 : vector<2x8x8xf32> to vector<2x8x8xbf16>
    %c1_36 = arith.constant 1 : index
    %c0_37 = arith.constant 0 : index
    %c1_38 = arith.constant 1 : index
    %c0_39 = arith.constant 0 : index
    %c0_40 = arith.constant 0 : index
    %48 = vector.load %arg4[%c1_36, %c0_37, %c1_38, %c0_39, %c0_40] : memref<2x2x4x8x8xbf16, #tpu.memory_space<vmem>>, vector<1x2x1x8x8xbf16>
    %49 = vector.shape_cast %48 : vector<1x2x1x8x8xbf16> to vector<2x8x8xbf16>
    %50 = vector.shape_cast %47 : vector<2x8x8xbf16> to vector<1x2x1x8x8xbf16>
    tpu.vector_store %arg4[%c1_36, %c0_37, %c1_38, %c0_39, %c0_40], %50 {strides = array<i32>} : memref<2x2x4x8x8xbf16, #tpu.memory_space<vmem>>, vector<1x2x1x8x8xbf16>,
    %51 = vector.extract_strided_slice %38 {offsets = [0, 16], sizes = [16, 8], strides = [1, 1]} : vector<16x32xf32> to vector<16x8xf32>
    %52 = vector.shape_cast %51 : vector<16x8xf32> to vector<2x8x8xf32>
    %53 = arith.truncf %52 : vector<2x8x8xf32> to vector<2x8x8xbf16>
    %c1_41 = arith.constant 1 : index
    %c0_42 = arith.constant 0 : index
    %c2_43 = arith.constant 2 : index
    %c0_44 = arith.constant 0 : index
    %c0_45 = arith.constant 0 : index
    %54 = vector.load %arg4[%c1_41, %c0_42, %c2_43, %c0_44, %c0_45] : memref<2x2x4x8x8xbf16, #tpu.memory_space<vmem>>, vector<1x2x1x8x8xbf16>
    %55 = vector.shape_cast %54 : vector<1x2x1x8x8xbf16> to vector<2x8x8xbf16>
    %56 = vector.shape_cast %53 : vector<2x8x8xbf16> to vector<1x2x1x8x8xbf16>
    tpu.vector_store %arg4[%c1_41, %c0_42, %c2_43, %c0_44, %c0_45], %56 {strides = array<i32>} : memref<2x2x4x8x8xbf16, #tpu.memory_space<vmem>>, vector<1x2x1x8x8xbf16>,
    %57 = vector.extract_strided_slice %38 {offsets = [0, 24], sizes = [16, 8], strides = [1, 1]} : vector<16x32xf32> to vector<16x8xf32>
    %58 = vector.shape_cast %57 : vector<16x8xf32> to vector<2x8x8xf32>
    %59 = arith.truncf %58 : vector<2x8x8xf32> to vector<2x8x8xbf16>
    %c1_46 = arith.constant 1 : index
    %c0_47 = arith.constant 0 : index
    %c3_48 = arith.constant 3 : index
    %c0_49 = arith.constant 0 : index
    %c0_50 = arith.constant 0 : index
    %60 = vector.load %arg4[%c1_46, %c0_47, %c3_48, %c0_49, %c0_50] : memref<2x2x4x8x8xbf16, #tpu.memory_space<vmem>>, vector<1x2x1x8x8xbf16>
    %61 = vector.shape_cast %60 : vector<1x2x1x8x8xbf16> to vector<2x8x8xbf16>
    %62 = vector.shape_cast %59 : vector<2x8x8xbf16> to vector<1x2x1x8x8xbf16>
    tpu.vector_store %arg4[%c1_46, %c0_47, %c3_48, %c0_49, %c0_50], %62 {strides = array<i32>} : memref<2x2x4x8x8xbf16, #tpu.memory_space<vmem>>, vector<1x2x1x8x8xbf16>,
    return
  }
  func.func @transform_0(%arg0: i32) -> (i32, i32) {
    %c0_i32 = arith.constant 0 : i32
    %c0_i32_0 = arith.constant 0 : i32
    %c0_i32_1 = arith.constant 0 : i32
    return %c0_i32, %c0_i32_0 : i32, i32
  }
  func.func @transform_1(%arg0: i32) -> (i32, i32, i32) {
    %c0_i32 = arith.constant 0 : i32
    %c0_i32_0 = arith.constant 0 : i32
    %c0_i32_1 = arith.constant 0 : i32
    return %arg0, %c0_i32, %c0_i32_0 : i32, i32, i32
  }
  func.func @transform_2(%arg0: i32) -> (i32, i32, i32) {
    %c0_i32 = arith.constant 0 : i32
    %c0_i32_0 = arith.constant 0 : i32
    %c0_i32_1 = arith.constant 0 : i32
    return %arg0, %c0_i32, %c0_i32_0 : i32, i32, i32
  }
  func.func @transform_3(%arg0: i32) -> (i32, i32, i32, i32, i32) {
    %c0_i32 = arith.constant 0 : i32
    %c0_i32_0 = arith.constant 0 : i32
    %c0_i32_1 = arith.constant 0 : i32
    %c0_i32_2 = arith.constant 0 : i32
    %c0_i32_3 = arith.constant 0 : i32
    return %arg0, %c0_i32, %c0_i32_0, %c0_i32_1, %c0_i32_2 : i32, i32, i32, i32, i32
  }
}

</mosaic_0001>

<bundles_post_ra>
// kernel: tpu_custom_call.1
= control target key start
LH: loop header
LB: loop body
LE: loop exit
PB: predicated region body
PF: predicated region fallthrough
CT: control target
= control target key end

     0   :  { %8 = vsyncpa [#allocation3], 0  ;;  %s1114_s0 = inlined_call_operand.hbm [shape: bf16[16,32], index: 0, kind: input, shape index: {}]   ;;  %s1115_s1 = inlined_call_operand.hbm [shape: bf16[4,32,32], index: 1, kind: input, shape index: {}]   ;;  %s1116_s2 = inlined_call_operand.vmem [shape: f32[4,1,32], index: 2, kind: input, shape index: {}]   ;;  %s1117_s3 = inlined_call_operand.hbm [shape: bf16[4,2,4,8,8], index: 3, kind: output, shape index: {}]  }
   0x1   :  { %9 = vsyncpa [#allocation6], 0 }
   0x2   :  { %11 = vsyncpa [#allocation6 + $0x1], 0 }
   0x3   :  { %12 = vsyncpa [#allocation4], 0 }
   0x4   :  { %14 = vsyncpa [#allocation4 + $0x1], 0  ;;  %s867_s12 = smov 0   ;;  %s869_s13 = smov 0  }
   0x5   :  { %s871_s14 = smov 0   ;;  %s873_s15 = smov 0  }
   0x6 LB: > { %s888_s16 = sadd.s32 4294967295, %s833_s15   ;;  %s553_s17 = sadd.s32 4294967294, %s833_s15   ;;  %s833_s15 = sphi %s873_s15, %s1137_s15   ;;  %s829_s14 = sphi %s871_s14, %s1136_s14   ;;  %s825_s13 = sphi %s869_s13, %s1135_s13   ;;  %s821_s12 = sphi %s867_s12, %s1134_s12  }
   0x7   : > { %p61_p0 = scmp.ne.s32.totalorder %s825_s13, %s821_s12  ;;  %p1118_p1 = scmp.eq.s32.totalorder %s888_s16, 0 }
   0x8   : > { %p117_p3 = scmp.eq.s32.totalorder %s553_s17, 1  ;;  %p554_p5 = scmp.ge.s32.totalorder %s833_s15, 1 }
   0x9   : > { %p897_p4 = por %p1118_p1, %p61_p0  ;;  %p124_p7 = scmp.lt.s32.totalorder %s833_s15, 3 }
   0xa   : > { %p902_p6 = por %p117_p3, %p61_p0  ;;  %s835_s21 = smov [#allocation2]  }
   0xb   : > { %s1121_s18 = scalar_select %p897_p4, 1, 0 }
   0xc   : > { %s1122_s19 = scalar_select %p902_p6, 1, 0 }
   0xd   : > { %p907_p8 = pnand %p554_p5, %p124_p7  ;;  %s136_s22 = sshll.u32 %s835_s21, 4  ;;  %s911_s22 = int_to_ptr.vmem [resolvable:$true] %s136_s22 }
   0xe   : > { %s923_s24 = sadd.s32 1, %s833_s15   ;;  %s48_s25 = sadd.s32 1, %s829_s14 }
   0xf   : > { %s1123_s20 = scalar_select %p907_p8, 1, 0 }
  0x10   : > { %p642_p9 = pneg %p907_p8  ;;  %s45_s26 = ssub.s32 %s833_s15, %s923_s24 }
  0x11   : > { %s705_s29 = scalar_lea.hbm %s1114_s0, 128 }
  0x12   : > { %p918_p11 = pnand %p642_p9, %p1118_p1  ;;  %p706_p12 = scmp.ne.s32.totalorder %s1114_s0, %s705_s29 }
  0x13   : > { %p712_p5 = scmp.lt.u32.totalorder %s705_s29, %s1114_s0 }
  0x14   : > { %p707_p13 = pneg %p918_p11 }
  0x16   : > { %p708_p0 = pnand %p707_p13, %p706_p12 }
  0x18   : > { %p709_p3 = pneg %p708_p0 }
  0x1a   : > { %p714_p7 = pnand %p712_p5, %p709_p3 }
  0x1c   : > { %717 = shalt.err (!%p714_p7)
}
  0x1d   : > { %s718_s7 = scalar_lea.vmem %s911_s22, 128  ;;  %p726_p2 = scmp.lt.s32.totalorder %s911_s22, %s911_s22 }
  0x1e   : > { %p719_p9 = scmp.ne.s32.totalorder %s911_s22, %s718_s7  ;;  %p727_p6 = scmp.lt.s32.totalorder %s718_s7, %s718_s7 }
  0x20   : > { %p721_p10 = pnand %p719_p9, %p707_p13  ;;  %p728_p4 = por %p727_p6, %p726_p2 }
  0x22   : > { %p722_p1 = pneg %p721_p10 }
  0x24   : > { %p729_p8 = pnand %p728_p4, %p722_p1 }
  0x26   : > { %732 = shalt.err (!%p729_p8)
}
  0x27   : > { %s836_s8 = smov 64   ;;  %s837_s9 = smov 4  }
  0x28   : > { %645 = dma.hbm_to_vmem [thread:$0]  (!%p918_p11), %s1114_s0, 128, %s911_s22, [#allocation3], %s836_s8, %s836_s8, %s837_s9  }
  0x29   : > { %p46_p1 = scmp.eq.s32.totalorder %s45_s26, 0  ;;  %p55_p2 = scmp.ne.s32.totalorder %s829_s14, %s825_s13 }
  0x2a   : > { %p56_p4 = scmp.eq.s32.totalorder %s833_s15, 0  ;;  %p655_p6 = scmp.lt.s32.totalorder %s833_s15, 2 }
  0x2b   : > { %s957_s17 = scalar_select %p46_p1, %s829_s14, %s48_s25  }
  0x2c   : > { %p57_p8 = por %p56_p4, %p55_p2  ;;  %p1125_p10 = scmp.eq.s32.totalorder %s888_s16, 1 }
  0x2d   : > { %s150_s23 = sand.u32 1, %s829_s14   ;;  %s605_s27 = sshll.u32 %s833_s15, 9 }
  0x2e   : > { %p961_p12 = por %p1125_p10, %p55_p2  ;;  %s557_s28 = sshll.u32 %s150_s23, 5 }
  0x2f   : > { %s970_s4 = scalar_lea.hbm %s1115_s1, %s605_s27  ;;  %s154_s22 = scalar_lea.vmem [#allocation5], %s557_s28 }
  0x30   : > { %s162_s25 = sshll.u32 %s154_s22, 4  ;;  %p972_p11 = pnand %p655_p6, %p57_p8  ;;  %s976_s25 = int_to_ptr.vmem [resolvable:$true] %s162_s25 }
  0x31   : > { %s978_s5 = scalar_lea.sflag [#allocation6], %s150_s23  ;;  %s733_s6 = scalar_lea.hbm %s970_s4, 512 }
  0x32   : > { %p734_p13 = scmp.ne.s32.totalorder %s970_s4, %s733_s6  ;;  %p735_p0 = pneg %p972_p11 }
  0x33   : > { %s738_s11 = scalar_lea.hbm %s1115_s1, 1024  ;;  %p739_p7 = scmp.lt.u32.totalorder %s970_s4, %s1115_s1 }
  0x34   : > { %p736_p3 = pnand %p735_p0, %p734_p13  ;;  %p740_p9 = scmp.lt.u32.totalorder %s738_s11, %s733_s6 }
  0x35   : > { %p742_p2 = scmp.lt.u32.totalorder %s733_s6, %s970_s4 }
  0x36   : > { %p737_p5 = pneg %p736_p3  ;;  %p741_p1 = por %p740_p9, %p739_p7 }
  0x38   : > { %p743_p4 = por %p742_p2, %p741_p1 }
  0x3a   : > { %p744_p6 = pnand %p743_p4, %p737_p5 }
  0x3c   : > { %747 = shalt.err (!%p744_p6)
}
  0x3d   : > { %s748_s23 = scalar_lea.vmem %s976_s25, 512  ;;  %s838_s29 = smov [#allocation5]  }
  0x3e   : > { %p749_p8 = scmp.ne.s32.totalorder %s976_s25, %s748_s23  ;;  %s753_s30 = sshll.u32 %s838_s29, 4  ;;  %s754_s30 = int_to_ptr.vmem [resolvable:$false] %s753_s30 }
  0x3f   : > { %s755_s22 = scalar_lea.vmem %s754_s30, 1024  ;;  %p756_p3 = scmp.lt.s32.totalorder %s976_s25, %s754_s30 }
  0x40   : > { %p751_p10 = pnand %p749_p8, %p735_p0  ;;  %p757_p7 = scmp.lt.s32.totalorder %s755_s22, %s748_s23 }
  0x42   : > { %p752_p13 = pneg %p751_p10  ;;  %p758_p9 = por %p757_p7, %p756_p3 }
  0x44   : > { %p759_p1 = pnand %p758_p9, %p752_p13 }
  0x46   : > { %762 = shalt.err (!%p759_p1)
}
  0x47   : > { %649 = dma.hbm_to_vmem [thread:$0]  (!%p972_p11), %s970_s4, 512, %s976_s25, %s978_s5, %s836_s8, %s836_s8, %s837_s9  }
  0x48   : > { %p1128_p0 = scmp.ne.s32.totalorder %s1123_s20, 0 }
  0x49   : > { %p1129_p5 = scmp.eq.s32.totalorder (!%p1128_p0), %s888_s16, 0 }
  0x4a   : > { %182 = sbr.rel (%p1128_p0) target bundleno = 462 (0x1ce), region = 32 }
  0x51   : > { %808 = dma.done.wait (%p1129_p5), [#allocation3], 128   ;;  %p1130_p2 = pmov %p1129_p5 }
  0x52   : > { %s1016_s6 = sand.u32 1, %s825_s13   ;;  %p1131_p4 = scmp.ne.s32.totalorder %s1121_s18, 0 }
  0x53   : > { %810 = vsyncadd (%p1130_p2), [#allocation3], 4294967168  ;;  %s563_s26 = sshll.u32 %s1016_s6, 5  ;;  %s189_s7 = scalar_lea.sflag [#allocation6], %s1016_s6 }
  0x54   : > { %s192_s10 = scalar_lea.vmem [#allocation5], %s563_s26 }
  0x55   : > { %812 = dma.done.wait (%p1131_p4), %s189_s7, 512  }
  0x56   : > { %814 = vsyncadd (%p1131_p4), %s189_s7, 4294966784  ;;  %v839_v0 = vmov 0.0   ;;  %vm840_vm0 = vmmov 0   ;;  %v700_v1 = vld [vmem:[%s192_s10] sm:$0xff]   ;;  %v701_v2 = vld [vmem:[%s192_s10 + $0x8] sm:$0xff]   ;;  %vm257_vm1 = vcmask 261120  }
  0x57   : > { %618 = vmatprep.subr.bf16.mxu0 %v839_v0  ;;  %626 = vmatprep.subr.bf16.mxu1 %v839_v0  ;;  %v702_v3 = vld [vmem:[%s192_s10 + $0x10] sm:$0xff]   ;;  %v704_v4 = vld [vmem:[%s192_s10 + $0x18] sm:$0xff]   ;;  %s565_s18 = sshll.u32 %s888_s16, 1  ;;  %s564_s4 = sshll.u32 %s1016_s6, 6  ;;  %vm304_vm2 = vcmask 60416  }
  0x58   : > { %622 = vmatprep.mubr.msk.bf16.mxu0 %vm840_vm0, %v839_v0  ;;  %630 = vmatprep.mubr.msk.bf16.mxu1 %vm840_vm0, %v839_v0  ;;  %v703_v5 = vld [vmem:[#allocation2] sm:$0xff]   ;;  %p221_p11 = scmp.lt.s32.totalorder %s565_s18, 3  ;;  %s1029_s25 = scalar_lea.vmem [#allocation7], %s564_s4 }
  0x59   : > { %619 = vmatpush3.bf16.msra.mxu0 %v700_v1  ;;  %627 = vmatpush3.bf16.msra.mxu1 %v702_v3  ;;  %s841_s5 = smov 112   ;;  %s842_s11 = smov 120  }
  0x5a   : > { %620 = vmatprep.subr.bf16.mxu0 %v839_v0  ;;  %628 = vmatprep.subr.bf16.mxu1 %v839_v0  ;;  %s1139_s18 = smov (!%p221_p11, %s565_s18), 3  ;;  %s843_s27 = smov 104  }
  0x5b   : > { %s223_s9 = scalar_lea.vmem %s1116_s2, %s1139_s18  ;;  %s611_s28 = sshll.u32 %s888_s16, 10 }
  0x5c   : > { %v566_v6 = vld [vmem:[%s223_s9] ss:$0 sm:$0xff]  ;;  %v584_v8 = vld [vmem:[%s223_s9 + $0x1] ss:$0 sm:$0xff]  ;;  %s459_s23 = sshll.u32 %s1029_s25, 4  ;;  %s1064_s22 = scalar_lea.hbm %s1117_s3, %s611_s28  ;;  %s1066_s23 = int_to_ptr.vmem [resolvable:$true] %s459_s23 }
  0x5d   : > { %621 = vmatpush3.bf16.msra.mxu0 %v701_v2  ;;  %629 = vmatpush3.bf16.msra.mxu1 %v704_v4  ;;  %s445_s16 = scalar_lea.sflag [#allocation4], %s1016_s6  ;;  %s763_s26 = scalar_lea.vmem %s1066_s23, 1024 }
  0x5e   : > { %p764_p6 = scmp.ne.s32.totalorder %s1066_s23, %s763_s26  ;;  %s844_s7 = smov [#allocation7]  }
  0x5f   : > { %s767_s10 = sshll.u32 %s844_s7, 4  ;;  %s768_s10 = int_to_ptr.vmem [resolvable:$false] %s767_s10 }
  0x60   : > { %623 = vmatmul.mubr.msk.bf16.vlgmr.msra.gmra.mrb[0].mxu0 %vm257_vm1, %v703_v5  ;;  %631 = vmatmul.mubr.msk.bf16.vlgmr.msra.gmra.mrb[0].mxu1 %vm257_vm1, %v703_v5  ;;  %p765_p8 = pnand %p764_p6, %p961_p12  ;;  %s769_s18 = scalar_lea.vmem %s768_s10, 2048 }
  0x61   : > { %p770_p13 = scmp.lt.s32.totalorder %s1066_s23, %s768_s10  ;;  %p771_p3 = scmp.lt.s32.totalorder %s769_s18, %s763_s26 }
  0x62   : > { %p766_p10 = pneg %p765_p8 }
  0x63   : > { %p772_p7 = por %p771_p3, %p770_p13 }
  0x65   : > { %p773_p9 = pnand %p772_p7, %p766_p10 }
 0x133   : > { %v295_v7 = vpop.f32.mrb[0].mxu0  ;;  %v399_v12 = vpop.f32.mrb[0].mxu1 }
 0x134   : > { %v296_v9 = vadd.f32 %v566_v6, %v295_v7  ;;  %v624_v10 = vpop.f32.mrb[1].mxu0  ;;  %v400_v16 = vadd.f32 %v584_v8, %v399_v12  ;;  %v632_v17 = vpop.f32.mrb[1].mxu1 }
 0x135   : > { %v298_v11 = vpop.f32.mrb[2].mxu0  ;;  %v402_v18 = vpop.f32.mrb[2].mxu1 }
 0x136   : > { %v302_v13 = vpack.c.bf16 %v296_v9, %v296_v9  ;;  %v299_v14 = vadd.f32 %v566_v6, %v298_v11  ;;  %v625_v15 = vpop.f32.mrb[3].mxu0  ;;  %v406_v20 = vpack.c.bf16 %v400_v16, %v400_v16  ;;  %v403_v21 = vadd.f32 %v584_v8, %v402_v18  ;;  %v633_v22 = vpop.f32.mrb[3].mxu1 }
 0x138   : > { %305 = vst.msk [vmem:[%s1029_s25] sm:$0xf] %vm304_vm2, %v302_v13  ;;  %v303_v19 = vpack.c.bf16 %v299_v14, %v299_v14  ;;  %322 = vrot.lane.b32.xlu1 %v302_v13, %s841_s5  ;;  %313 = vrot.lane.b32.xlu0 %v302_v13, %s842_s11  ;;  %588 = vst.msk [vmem:[%s1029_s25 + $0x20] sm:$0xf] %vm304_vm2, %v406_v20  ;;  %v407_v23 = vpack.c.bf16 %v403_v21, %v403_v21 }
 0x13a   : > { %306 = vst.msk [vmem:[%s1029_s25 + $0x10] sm:$0xf] %vm304_vm2, %v303_v19  ;;  %589 = vst.msk [vmem:[%s1029_s25 + $0x30] sm:$0xf] %vm304_vm2, %v407_v23 }
 0x13c   : > { %331 = vrot.lane.b32.xlu0 %v302_v13, %s843_s27  ;;  %324 = vrot.lane.b32.xlu1 %v303_v19, %s841_s5 }
 0x140   : > { %417 = vrot.lane.b32.xlu0 %v406_v20, %s842_s11  ;;  %333 = vrot.lane.b32.xlu1 %v303_v19, %s843_s27 }
 0x144   : > { %426 = vrot.lane.b32.xlu0 %v406_v20, %s841_s5  ;;  %419 = vrot.lane.b32.xlu1 %v407_v23, %s842_s11 }
 0x148   : > { %428 = vrot.lane.b32.xlu1 %v407_v23, %s841_s5  ;;  %315 = vrot.lane.b32.xlu0 %v303_v19, %s842_s11 }
 0x14c   : > { %437 = vrot.lane.b32.xlu1 %v407_v23, %s843_s27  ;;  %435 = vrot.lane.b32.xlu0 %v406_v20, %s843_s27 }
 0x1aa   : > { %v323_v24 = vpop.permute.xlu1 %322  ;;  %v314_v25 = vpop.permute.xlu0 %313 }
 0x1ab   : > { %575 = vst.msk [vmem:[%s1029_s25 + $0x8] sm:$0xf] %vm304_vm2, %v323_v24  ;;  %573 = vst.msk [vmem:[%s1029_s25 + $0x4] sm:$0xf] %vm304_vm2, %v314_v25 }
 0x1ae   : > { %v332_v26 = vpop.permute.xlu0 %331  ;;  %v325_v27 = vpop.permute.xlu1 %324 }
 0x1af   : > { %577 = vst.msk [vmem:[%s1029_s25 + $0xc] sm:$0xf] %vm304_vm2, %v332_v26  ;;  %576 = vst.msk [vmem:[%s1029_s25 + $0x18] sm:$0xf] %vm304_vm2, %v325_v27 }
 0x1b2   : > { %v418_v28 = vpop.permute.xlu0 %417  ;;  %v334_v29 = vpop.permute.xlu1 %333 }
 0x1b3   : > { %592 = vst.msk [vmem:[%s1029_s25 + $0x24] sm:$0xf] %vm304_vm2, %v418_v28  ;;  %578 = vst.msk [vmem:[%s1029_s25 + $0x1c] sm:$0xf] %vm304_vm2, %v334_v29 }
 0x1b6   : > { %v427_v30 = vpop.permute.xlu0 %426  ;;  %v420_v31 = vpop.permute.xlu1 %419 }
 0x1b7   : > { %594 = vst.msk [vmem:[%s1029_s25 + $0x28] sm:$0xf] %vm304_vm2, %v427_v30  ;;  %593 = vst.msk [vmem:[%s1029_s25 + $0x34] sm:$0xf] %vm304_vm2, %v420_v31 }
 0x1ba   : > { %v429_v32 = vpop.permute.xlu1 %428  ;;  %v316_v33 = vpop.permute.xlu0 %315 }
 0x1bb   : > { %595 = vst.msk [vmem:[%s1029_s25 + $0x38] sm:$0xf] %vm304_vm2, %v429_v32  ;;  %574 = vst.msk [vmem:[%s1029_s25 + $0x14] sm:$0xf] %vm304_vm2, %v316_v33 }
 0x1be   : > { %v438_v34 = vpop.permute.xlu1 %437  ;;  %v436_v35 = vpop.permute.xlu0 %435 }
 0x1bf   : > { %597 = vst.msk [vmem:[%s1029_s25 + $0x3c] sm:$0xf] %vm304_vm2, %v438_v34  ;;  %596 = vst.msk [vmem:[%s1029_s25 + $0x2c] sm:$0xf] %vm304_vm2, %v436_v35 }
 0x1c0   : > { %776 = shalt.err (!%p773_p9)
}
 0x1c1   : > { %s777_s20 = scalar_lea.hbm %s1064_s22, 1024  ;;  %s781_s4 = scalar_lea.hbm %s1117_s3, 2048 }
 0x1c2   : > { %p778_p1 = scmp.ne.s32.totalorder %s1064_s22, %s777_s20  ;;  %p782_p2 = scmp.lt.u32.totalorder %s1064_s22, %s1117_s3 }
 0x1c3   : > { %p783_p4 = scmp.lt.u32.totalorder %s781_s4, %s777_s20  ;;  %p785_p6 = scmp.lt.u32.totalorder %s777_s20, %s1064_s22 }
 0x1c4   : > { %p779_p0 = pnand %p778_p1, %p961_p12 }
 0x1c5   : > { %p784_p11 = por %p783_p4, %p782_p2 }
 0x1c6   : > { %p780_p5 = pneg %p779_p0 }
 0x1c7   : > { %p786_p8 = por %p785_p6, %p784_p11 }
 0x1c9   : > { %p787_p10 = pnand %p786_p8, %p780_p5 }
 0x1cb   : > { %790 = shalt.err (!%p787_p10)
}
 0x1cc   : > { %s845_s11 = smov 64   ;;  %s846_s27 = smov 4  }
 0x1cd   : > { %640 = dma.vmem_to_hbm [thread:$0]  (%p961_p12), %s1066_s23, 1024, %s1064_s22, %s445_s16, %s845_s11, %s845_s11, %s846_s27  }
 0x1ce PF: > { %s474_s28 = sand.u32 1, %s821_s12   ;;  %p1132_p13 = scmp.ne.s32.totalorder %s1122_s19, 0 }
 0x1cf   : > { %p1133_p3 = scmp.ge.s32.totalorder %s833_s15, 2  ;;  %s475_s29 = scalar_lea.sflag [#allocation4], %s474_s28 }
 0x1d1   : > { %p651_p7 = pnand %p1133_p3, %p1132_p13 }
 0x1d3   : > { %816 = dma.done.wait (!%p651_p7), %s475_s29, 1024  }
 0x1d4   : > { %818 = vsyncadd (!%p651_p7), %s475_s29, 4294966272  ;;  %p17_p9 = scmp.ge.s32.totalorder %s923_s24, 4   ;;  %s1134_s12 = smov %s825_s13 }
 0x1d5   : > { %s1135_s13 = smov %s829_s14  ;;  %s1136_s14 = smov %s957_s17 }
 0x1d6   : > { %s1137_s15 = smov %s923_s24  ;;  %19 = sbr.rel (!%p17_p9) target bundleno = 6 (0x6), region = 94 }
 0x1dd   :  { %480 = vsyncpa [#allocation3], 1 }
 0x1de   :  { %482 = vsyncpa [#allocation3 + $0x1], 1 }
 0x1df   :  { %483 = vsyncpa [#allocation6], 1 }
 0x1e0   :  { %485 = vsyncpa [#allocation6 + $0x1], 1 }
 0x1e1   :  { %486 = vsyncpa [#allocation4], 1 }
 0x1e2   :  { %488 = vsyncpa [#allocation4 + $0x1], 1 }

</bundles_post_ra>
